<compile_context>
chip_gen: v7x
topology: tpu7x:2x2x1
jax: 0.10.0
libtpu: 0.0.40
codegen_flags: <defaults>
</compile_context>

<pallas_src>
import jax
import jax.numpy as jnp
from jax.experimental import pallas as pl
from jax.experimental.pallas import tpu as pltpu


def _relation_encoder_kernel(x_ref, w0_ref, b0_ref, w1_ref, b1_ref,
                             w2_ref, b2_ref, o_ref):
    """Three fused Linear+ReLU layers on one row-tile of relations."""
    x = x_ref[...]
    # MXU matmuls: operands in the weight dtype (bf16 by default), f32 acc.
    # Bias-add / ReLU stay f32 on the VPU.
    h = jnp.dot(x.astype(w0_ref.dtype), w0_ref[...],
                preferred_element_type=jnp.float32)
    h = jnp.maximum(h + b0_ref[...], 0.0)
    h = jnp.dot(h.astype(w1_ref.dtype), w1_ref[...],
                preferred_element_type=jnp.float32)
    h = jnp.maximum(h + b1_ref[...], 0.0)
    h = jnp.dot(h.astype(w2_ref.dtype), w2_ref[...],
                preferred_element_type=jnp.float32)
    h = jnp.maximum(h + b2_ref[...], 0.0)
    o_ref[...] = h.astype(o_ref.dtype)


def _round_up(x, m):
    return ((x + m - 1) // m) * m


def relation_encoder_forward(inputs, params, *, tile_m=512,
                             matmul_dtype=jnp.bfloat16):
    """inputs: [B, N, F] float32 -> outputs: [B, N, D] float32."""
    w0, b0, w1, b1, w2, b2 = params
    B, N, Z = inputs.shape
    H = w0.shape[1]
    D = w2.shape[1]
    M = B * N

    # Row tile: as large as possible (few grid steps, MXU-friendly M dim,
    # masked D<128 stores amortize over many sublanes) but never larger than
    # the padded problem.  16-sublane aligned so the same tiling is legal for
    # both f32 (8) and bf16 (16) packed operands.
    tile_m = max(16, min(tile_m, _round_up(M, 16)))
    tile_m = _round_up(tile_m, 16)
    m_pad = _round_up(M, tile_m)
    grid = (m_pad // tile_m,)

    # Cast activations/weights once in the wrapper (halves DMA bytes for bf16);
    # biases stay f32 for the VPU add.
    x = inputs.reshape(M, Z).astype(matmul_dtype)
    if m_pad != M:
        x = jnp.pad(x, ((0, m_pad - M), (0, 0)))
    w0c = w0.astype(matmul_dtype)
    w1c = w1.astype(matmul_dtype)
    w2c = w2.astype(matmul_dtype)
    b0r = b0.reshape(1, H).astype(jnp.float32)
    b1r = b1.reshape(1, H).astype(jnp.float32)
    b2r = b2.reshape(1, D).astype(jnp.float32)

    full = lambda i: (0, 0)  # weights/biases: same whole-array block every step

    flops = 2 * m_pad * (Z * H + H * H + H * D)
    bytes_accessed = (
        x.size * x.dtype.itemsize
        + sum(a.size * a.dtype.itemsize for a in (w0c, w1c, w2c, b0r, b1r, b2r))
        + m_pad * D * 4)

    out = pl.pallas_call(
        _relation_encoder_kernel,
        out_shape=jax.ShapeDtypeStruct((m_pad, D), jnp.float32),
        grid_spec=pltpu.PrefetchScalarGridSpec(
            num_scalar_prefetch=0,
            grid=grid,
            in_specs=[
                pl.BlockSpec((tile_m, Z), lambda i: (i, 0)),  # x row-tile
                pl.BlockSpec((Z, H), full),                   # W0 (resident)
                pl.BlockSpec((1, H), full),                   # b0
                pl.BlockSpec((H, H), full),                   # W1
                pl.BlockSpec((1, H), full),                   # b1
                pl.BlockSpec((H, D), full),                   # W2
                pl.BlockSpec((1, D), full),                   # b2
            ],
            out_specs=pl.BlockSpec((tile_m, D), lambda i: (i, 0)),
        ),
        compiler_params=pltpu.CompilerParams(
            dimension_semantics=("parallel",)),
        cost_estimate=pl.CostEstimate(
            flops=flops, transcendentals=0, bytes_accessed=bytes_accessed),
    )(x, w0c, b0r, w1c, b1r, w2c, b2r)

    if m_pad != M:
        out = out[:M]
    return out.reshape(B, N, D).astype(inputs.dtype)


def init_params(key, input_size, hidden_size, output_size):
    """Deterministic synthetic parameters. Weights stored as (in, out)."""
    ks = jax.random.split(key, 6)

    def lin(kw, kb, fan_in, fan_out):
        bound = 1.0 / jnp.sqrt(fan_in)
        w = jax.random.uniform(kw, (fan_in, fan_out), jnp.float32, -bound, bound)
        b = jax.random.uniform(kb, (fan_out,), jnp.float32, -bound, bound)
        return w, b

    w0, b0 = lin(ks[0], ks[1], input_size, hidden_size)
    w1, b1 = lin(ks[2], ks[3], hidden_size, hidden_size)
    w2, b2 = lin(ks[4], ks[5], hidden_size, output_size)
    return (w0, b0, w1, b1, w2, b2)


def _reference(inputs, params):
    w0, b0, w1, b1, w2, b2 = params
    B, N, Z = inputs.shape
    x = inputs.reshape(B * N, Z)
    x = jnp.maximum(x @ w0 + b0, 0.0)
    x = jnp.maximum(x @ w1 + b1, 0.0)
    x = jnp.maximum(x @ w2 + b2, 0.0)
    return x.reshape(B, N, w2.shape[1])


if __name__ == "__main__":
    key = jax.random.PRNGKey(0)
    k_in, k_in2, k_par = jax.random.split(key, 3)

    B, N, F = 2, 8, 16          # batch, num-relations, relation feature dim
    hidden_size, output_size = 32, 32

    inputs = jax.random.normal(k_in, (B, N, F), dtype=jnp.float32)
    params = init_params(k_par, F, hidden_size, output_size)
    ref = _reference(inputs, params)

    # 1) exact f32 path (strict check of the forward semantics).
    out_f32 = relation_encoder_forward(inputs, params, matmul_dtype=jnp.float32)
    out_f32 = jax.block_until_ready(out_f32)
    assert out_f32.shape == (B, N, output_size)
    assert jnp.allclose(out_f32, ref, atol=1e-5, rtol=1e-5)

    # 2) default bf16-MXU path (f32 accumulation) — loosened tolerance.
    out_bf16 = relation_encoder_forward(inputs, params)
    out_bf16 = jax.block_until_ready(out_bf16)
    assert out_bf16.shape == (B, N, output_size)
    assert jnp.allclose(out_bf16, ref, atol=3e-2, rtol=3e-2)

    # 3) M not a multiple of the row tile -> exercises the padding path.
    B2, N2 = 3, 50              # M = 150, padded to 160 inside the wrapper
    inputs2 = jax.random.normal(k_in2, (B2, N2, F), dtype=jnp.float32)
    ref2 = _reference(inputs2, params)
    out2 = jax.block_until_ready(relation_encoder_forward(inputs2, params))
    assert out2.shape == (B2, N2, output_size)
    assert jnp.allclose(out2, ref2, atol=3e-2, rtol=3e-2)

    print("KERNEL_OK")
</pallas_src>

<mosaic_0001>
module attributes {stable_mosaic.version = 11 : i64} {
  func.func @_relation_encoder_kernel(%arg0: i32, %arg1: memref<16x16xf32, #tpu.memory_space<vmem>>, %arg2: memref<16x32xf32, #tpu.memory_space<vmem>>, %arg3: memref<1x32xf32, #tpu.memory_space<vmem>>, %arg4: memref<32x32xf32, #tpu.memory_space<vmem>>, %arg5: memref<1x32xf32, #tpu.memory_space<vmem>>, %arg6: memref<32x32xf32, #tpu.memory_space<vmem>>, %arg7: memref<1x32xf32, #tpu.memory_space<vmem>>, %arg8: memref<16x32xf32, #tpu.memory_space<vmem>>) attributes {dimension_semantics = [#tpu.dimension_semantics<parallel>], iteration_bounds = array<i64: 1>, scalar_prefetch = 0 : i64, scratch_operands = 0 : i64, tpu.core_type = #tpu.core_type<tc>, window_params = [{transform_indices = @transform_0, window_bounds = array<i64: 16, 16>}, {pipeline_mode = #tpu.pipeline_mode<synchronous>, transform_indices = @transform_1, window_bounds = array<i64: 16, 32>}, {pipeline_mode = #tpu.pipeline_mode<synchronous>, transform_indices = @transform_2, window_bounds = array<i64: 1, 32>}, {pipeline_mode = #tpu.pipeline_mode<synchronous>, transform_indices = @transform_3, window_bounds = array<i64: 32, 32>}, {pipeline_mode = #tpu.pipeline_mode<synchronous>, transform_indices = @transform_4, window_bounds = array<i64: 1, 32>}, {pipeline_mode = #tpu.pipeline_mode<synchronous>, transform_indices = @transform_5, window_bounds = array<i64: 32, 32>}, {pipeline_mode = #tpu.pipeline_mode<synchronous>, transform_indices = @transform_6, window_bounds = array<i64: 1, 32>}, {transform_indices = @transform_7, window_bounds = array<i64: 16, 32>}]} {
    %c0 = arith.constant 0 : index
    %c0_0 = arith.constant 0 : index
    %0 = vector.load %arg1[%c0, %c0_0] : memref<16x16xf32, #tpu.memory_space<vmem>>, vector<16x16xf32>
    %c0_1 = arith.constant 0 : index
    %c0_2 = arith.constant 0 : index
    %1 = vector.load %arg2[%c0_1, %c0_2] : memref<16x32xf32, #tpu.memory_space<vmem>>, vector<16x32xf32>
    %cst = arith.constant dense<0.000000e+00> : vector<16x32xf32>
    %2 = tpu.matmul %0, %1, %cst {dimension_numbers = #tpu.dot_dimension_numbers<[1], [0], [0], [1], [0, 0, 1, 1], [], []>} : vector<16x16xf32>, vector<16x32xf32>, vector<16x32xf32> -> vector<16x32xf32>
    %c0_3 = arith.constant 0 : index
    %c0_4 = arith.constant 0 : index
    %3 = vector.load %arg3[%c0_3, %c0_4] : memref<1x32xf32, #tpu.memory_space<vmem>>, vector<1x32xf32>
    %4 = vector.broadcast %3 : vector<1x32xf32> to vector<16x32xf32>
    %5 = arith.addf %2, %4 : vector<16x32xf32>
    %cst_5 = arith.constant 0.000000e+00 : f32
    %6 = vector.broadcast %cst_5 : f32 to vector<16x32xf32>
    %7 = arith.maximumf %5, %6 : vector<16x32xf32>
    %c0_6 = arith.constant 0 : index
    %c0_7 = arith.constant 0 : index
    %8 = vector.load %arg4[%c0_6, %c0_7] : memref<32x32xf32, #tpu.memory_space<vmem>>, vector<32x32xf32>
    %cst_8 = arith.constant dense<0.000000e+00> : vector<16x32xf32>
    %9 = tpu.matmul %7, %8, %cst_8 {dimension_numbers = #tpu.dot_dimension_numbers<[1], [0], [0], [1], [0, 0, 1, 1], [], []>} : vector<16x32xf32>, vector<32x32xf32>, vector<16x32xf32> -> vector<16x32xf32>
    %c0_9 = arith.constant 0 : index
    %c0_10 = arith.constant 0 : index
    %10 = vector.load %arg5[%c0_9, %c0_10] : memref<1x32xf32, #tpu.memory_space<vmem>>, vector<1x32xf32>
    %11 = vector.broadcast %10 : vector<1x32xf32> to vector<16x32xf32>
    %12 = arith.addf %9, %11 : vector<16x32xf32>
    %cst_11 = arith.constant 0.000000e+00 : f32
    %13 = vector.broadcast %cst_11 : f32 to vector<16x32xf32>
    %14 = arith.maximumf %12, %13 : vector<16x32xf32>
    %c0_12 = arith.constant 0 : index
    %c0_13 = arith.constant 0 : index
    %15 = vector.load %arg6[%c0_12, %c0_13] : memref<32x32xf32, #tpu.memory_space<vmem>>, vector<32x32xf32>
    %cst_14 = arith.constant dense<0.000000e+00> : vector<16x32xf32>
    %16 = tpu.matmul %14, %15, %cst_14 {dimension_numbers = #tpu.dot_dimension_numbers<[1], [0], [0], [1], [0, 0, 1, 1], [], []>} : vector<16x32xf32>, vector<32x32xf32>, vector<16x32xf32> -> vector<16x32xf32>
    %c0_15 = arith.constant 0 : index
    %c0_16 = arith.constant 0 : index
    %17 = vector.load %arg7[%c0_15, %c0_16] : memref<1x32xf32, #tpu.memory_space<vmem>>, vector<1x32xf32>
    %18 = vector.broadcast %17 : vector<1x32xf32> to vector<16x32xf32>
    %19 = arith.addf %16, %18 : vector<16x32xf32>
    %cst_17 = arith.constant 0.000000e+00 : f32
    %20 = vector.broadcast %cst_17 : f32 to vector<16x32xf32>
    %21 = arith.maximumf %19, %20 : vector<16x32xf32>
    %c0_18 = arith.constant 0 : index
    %c0_19 = arith.constant 0 : index
    %22 = vector.load %arg8[%c0_18, %c0_19] : memref<16x32xf32, #tpu.memory_space<vmem>>, vector<16x32xf32>
    tpu.vector_store %arg8[%c0_18, %c0_19], %21 {strides = array<i32>} : memref<16x32xf32, #tpu.memory_space<vmem>>, vector<16x32xf32>,
    return
  }
  func.func @transform_0(%arg0: i32) -> (i32, i32) {
    %c0_i32 = arith.constant 0 : i32
    %c0_i32_0 = arith.constant 0 : i32
    return %arg0, %c0_i32 : i32, i32
  }
  func.func @transform_1(%arg0: i32) -> (i32, i32) {
    %c0_i32 = arith.constant 0 : i32
    %c0_i32_0 = arith.constant 0 : i32
    %c0_i32_1 = arith.constant 0 : i32
    return %c0_i32, %c0_i32_0 : i32, i32
  }
  func.func @transform_2(%arg0: i32) -> (i32, i32) {
    %c0_i32 = arith.constant 0 : i32
    %c0_i32_0 = arith.constant 0 : i32
    %c0_i32_1 = arith.constant 0 : i32
    return %c0_i32, %c0_i32_0 : i32, i32
  }
  func.func @transform_3(%arg0: i32) -> (i32, i32) {
    %c0_i32 = arith.constant 0 : i32
    %c0_i32_0 = arith.constant 0 : i32
    %c0_i32_1 = arith.constant 0 : i32
    return %c0_i32, %c0_i32_0 : i32, i32
  }
  func.func @transform_4(%arg0: i32) -> (i32, i32) {
    %c0_i32 = arith.constant 0 : i32
    %c0_i32_0 = arith.constant 0 : i32
    %c0_i32_1 = arith.constant 0 : i32
    return %c0_i32, %c0_i32_0 : i32, i32
  }
  func.func @transform_5(%arg0: i32) -> (i32, i32) {
    %c0_i32 = arith.constant 0 : i32
    %c0_i32_0 = arith.constant 0 : i32
    %c0_i32_1 = arith.constant 0 : i32
    return %c0_i32, %c0_i32_0 : i32, i32
  }
  func.func @transform_6(%arg0: i32) -> (i32, i32) {
    %c0_i32 = arith.constant 0 : i32
    %c0_i32_0 = arith.constant 0 : i32
    %c0_i32_1 = arith.constant 0 : i32
    return %c0_i32, %c0_i32_0 : i32, i32
  }
  func.func @transform_7(%arg0: i32) -> (i32, i32) {
    %c0_i32 = arith.constant 0 : i32
    %c0_i32_0 = arith.constant 0 : i32
    return %arg0, %c0_i32 : i32, i32
  }
}

</mosaic_0001>

<bundles_post_ra>
// kernel: tpu_custom_call.1
= control target key start
LH: loop header
LB: loop body
LE: loop exit
PB: predicated region body
PF: predicated region fallthrough
CT: control target
= control target key end

     0   :  { %12 = vsyncpa [#allocation3], 0  ;;  %s737_s0 = inlined_call_operand.hbm [shape: f32[16,16], index: 0, kind: input, shape index: {}]   ;;  %s738_s1 = inlined_call_operand.hbm [shape: f32[16,32], index: 1, kind: input, shape index: {}]   ;;  %s739_s2 = inlined_call_operand.vmem [shape: f32[1,32], index: 2, kind: input, shape index: {}]   ;;  %s740_s3 = inlined_call_operand.hbm [shape: f32[32,32], index: 3, kind: input, shape index: {}]   ;;  %s741_s4 = inlined_call_operand.vmem [shape: f32[1,32], index: 4, kind: input, shape index: {}]   ;;  %s742_s5 = inlined_call_operand.hbm [shape: f32[32,32], index: 5, kind: input, shape index: {}]   ;;  %s743_s6 = inlined_call_operand.vmem [shape: f32[1,32], index: 6, kind: input, shape index: {}]   ;;  %s744_s7 = inlined_call_operand.hbm [shape: f32[16,32], index: 7, kind: output, shape index: {}]  }
   0x1   :  { %13 = vsyncpa [#allocation6], 0 }
   0x2   :  { %14 = vsyncpa [#allocation9], 0 }
   0x3   :  { %15 = vsyncpa [#allocation4], 0  ;;  %s586_s24 = smov [#allocation5]   ;;  %s587_s26 = smov [#allocation2]  }
   0x4   :  { %s33_s25 = sshll.u32 %s586_s24, 4  ;;  %s21_s27 = sshll.u32 %s587_s26, 4  ;;  %s34_s25 = int_to_ptr.vmem [resolvable:$true] %s33_s25  ;;  %s633_s27 = int_to_ptr.vmem [resolvable:$true] %s21_s27 }
   0x5   :  { %s468_s30 = scalar_lea.hbm %s738_s1, 256 }
   0x6   :  { %p469_p0 = scmp.ne.s32.totalorder %s738_s1, %s468_s30  ;;  %p472_p1 = scmp.lt.u32.totalorder %s468_s30, %s738_s1 }
   0x8   :  { %p474_p2 = pnand %p472_p1, %p469_p0 }
   0xa   :  { %477 = shalt.err (!%p474_p2)
}
   0xb   :  { %s478_s12 = scalar_lea.vmem %s34_s25, 256  ;;  %p483_p4 = scmp.lt.s32.totalorder %s34_s25, %s34_s25 }
   0xc   :  { %p479_p3 = scmp.ne.s32.totalorder %s34_s25, %s478_s12  ;;  %p484_p5 = scmp.lt.s32.totalorder %s478_s12, %s478_s12 }
   0xe   :  { %p485_p6 = por %p484_p5, %p483_p4 }
  0x10   :  { %p486_p7 = pnand %p485_p6, %p479_p3 }
  0x12   :  { %489 = shalt.err (!%p486_p7)
}
  0x13   :  { %s588_s13 = smov 128   ;;  %s589_s14 = smov 8  }
  0x14   :  { %39 = dma.hbm_to_vmem [thread:$0]  %s738_s1, 256, %s34_s25, [#allocation6], %s588_s13, %s588_s13, %s589_s14  }
  0x15   :  { %s490_s19 = scalar_lea.hbm %s737_s0, 256 }
  0x16   :  { %p491_p8 = scmp.ne.s32.totalorder %s737_s0, %s490_s19  ;;  %p494_p9 = scmp.lt.u32.totalorder %s490_s19, %s737_s0 }
  0x18   :  { %p496_p10 = pnand %p494_p9, %p491_p8 }
  0x1a   :  { %499 = shalt.err (!%p496_p10)
}
  0x1b   :  { %s500_s24 = scalar_lea.vmem %s633_s27, 256  ;;  %p505_p12 = scmp.lt.s32.totalorder %s633_s27, %s633_s27 }
  0x1c   :  { %p501_p11 = scmp.ne.s32.totalorder %s633_s27, %s500_s24  ;;  %p506_p13 = scmp.lt.s32.totalorder %s500_s24, %s500_s24 }
  0x1e   :  { %p507_p0 = por %p506_p13, %p505_p12 }
  0x20   :  { %p508_p1 = pnand %p507_p0, %p501_p11 }
  0x22   :  { %511 = shalt.err (!%p508_p1)
}
  0x23   :  { %27 = dma.hbm_to_vmem [thread:$0]  %s737_s0, 256, %s633_s27, [#allocation3], %s588_s13, %s588_s13, %s589_s14  }
  0x24   :  { %s590_s26 = smov [#allocation7]   ;;  %s591_s29 = smov [#allocation8]  }
  0x25   :  { %s47_s28 = sshll.u32 %s590_s26, 4  ;;  %s61_s30 = sshll.u32 %s591_s29, 4  ;;  %s48_s28 = int_to_ptr.vmem [resolvable:$true] %s47_s28  ;;  %s670_s30 = int_to_ptr.vmem [resolvable:$true] %s61_s30 }
  0x26   :  { %s512_s10 = scalar_lea.hbm %s740_s3, 512 }
  0x27   :  { %p513_p2 = scmp.ne.s32.totalorder %s740_s3, %s512_s10  ;;  %p516_p3 = scmp.lt.u32.totalorder %s512_s10, %s740_s3 }
  0x29   :  { %p518_p4 = pnand %p516_p3, %p513_p2 }
  0x2b   :  { %521 = shalt.err (!%p518_p4)
}
  0x2c   :  { %s522_s0 = scalar_lea.vmem %s48_s28, 512  ;;  %p527_p6 = scmp.lt.s32.totalorder %s48_s28, %s48_s28 }
  0x2d   :  { %p523_p5 = scmp.ne.s32.totalorder %s48_s28, %s522_s0  ;;  %p528_p7 = scmp.lt.s32.totalorder %s522_s0, %s522_s0 }
  0x2f   :  { %p529_p8 = por %p528_p7, %p527_p6 }
  0x31   :  { %p530_p9 = pnand %p529_p8, %p523_p5 }
  0x33   :  { %533 = shalt.err (!%p530_p9)
}
  0x34   :  { %53 = dma.hbm_to_vmem [thread:$0]  %s740_s3, 512, %s48_s28, [#allocation6], %s588_s13, %s588_s13, %s589_s14  }
  0x35   :  { %s534_s20 = scalar_lea.hbm %s742_s5, 512 }
  0x36   :  { %p535_p10 = scmp.ne.s32.totalorder %s742_s5, %s534_s20  ;;  %p538_p11 = scmp.lt.u32.totalorder %s534_s20, %s742_s5 }
  0x38   :  { %p540_p12 = pnand %p538_p11, %p535_p10 }
  0x3a   :  { %543 = shalt.err (!%p540_p12)
}
  0x3b   :  { %s544_s1 = scalar_lea.vmem %s670_s30, 512  ;;  %p549_p0 = scmp.lt.s32.totalorder %s670_s30, %s670_s30 }
  0x3c   :  { %p545_p13 = scmp.ne.s32.totalorder %s670_s30, %s544_s1  ;;  %p550_p1 = scmp.lt.s32.totalorder %s544_s1, %s544_s1 }
  0x3e   :  { %p551_p2 = por %p550_p1, %p549_p0 }
  0x40   :  { %p552_p3 = pnand %p551_p2, %p545_p13 }
  0x42   :  { %555 = shalt.err (!%p552_p3)
}
  0x43   :  { %67 = dma.hbm_to_vmem [thread:$0]  %s742_s5, 512, %s670_s30, [#allocation9], %s588_s13, %s588_s13, %s589_s14  }
  0x44   :  { %578 = dma.done.wait [#allocation3], 256  }
  0x45   :  { %579 = vsyncadd [#allocation3], 4294967040 }
  0x46   :  { %580 = dma.done.wait [#allocation6], 768  }
  0x47   :  { %581 = vsyncadd [#allocation6], 4294966528 }
  0x48   :  { %582 = dma.done.wait [#allocation9], 512  }
  0x49   :  { %583 = vsyncadd [#allocation9], 4294966784  ;;  %vm93_vm0 = vcmask 130048   ;;  %v84_v0 = vld [vmem:[#allocation5] sm:$0xff]  ;;  %v85_v1 = vld [vmem:[#allocation5 + $0x8] sm:$0xff]  ;;  %vm188_vm1 = vcmask 261120  }
  0x4a   :  { %v82_v2 = vld [vmem:[#allocation2] sm:$0xff]  ;;  %v441_v3 = vpack.c.bf16 %v85_v1, %v84_v0  ;;  %v178_v5 = vld [vmem:[#allocation7 + $0x8] sm:$0xff]  ;;  %v179_v8 = vld [vmem:[#allocation7 + $0x10] sm:$0xff]  ;;  %s592_s8 = smov [#allocation10]  }
  0x4b   :  { %416 = vmatprep.mubr.msk.f32.mxu0 %vm93_vm0, %v82_v2  ;;  %v177_v4 = vld [vmem:[#allocation7] sm:$0xff]  ;;  %v83_v7 = vld [vmem:[#allocation2 + $0x8] sm:$0xff]  ;;  %v180_v9 = vld [vmem:[#allocation7 + $0x18] sm:$0xff]  ;;  %s373_s9 = sshll.u32 %s592_s8, 4  ;;  %s374_s9 = int_to_ptr.vmem [resolvable:$true] %s373_s9 }
  0x4c   :  { %v445_v6 = vpack.c.bf16 %v178_v5, %v177_v4  ;;  %442 = vmatprep.subr.bf16.mxu0 %v441_v3  ;;  %v449_v10 = vpack.c.bf16 %v180_v9, %v179_v8  ;;  %v272_v11 = vld [vmem:[#allocation8] sm:$0xff]  ;;  %v273_v12 = vld [vmem:[#allocation8 + $0x8] sm:$0xff]  ;;  %v274_v21 = vld [vmem:[#allocation8 + $0x10] sm:$0xff]  ;;  %p561_p5 = scmp.lt.s32.totalorder %s374_s9, %s374_s9 }
  0x4d   :  { %444 = vmatpush3.bf16.msra.mxu0 %v441_v3  ;;  %v453_v13 = vpack.c.bf16 %v273_v12, %v272_v11  ;;  %v387_v14 = vld [vmem:[%s739_s2] ss:$0 sm:$0xff]  ;;  %v275_v22 = vld [vmem:[#allocation8 + $0x18] sm:$0xff] }
  0x4e   :  { %446 = vmatprep.subr.bf16.mxu1 %v445_v6  ;;  %v457_v23 = vpack.c.bf16 %v275_v22, %v274_v21  ;;  %v390_v24 = vld [vmem:[%s741_s4] ss:$0 sm:$0xff]  ;;  %s556_s4 = scalar_lea.vmem %s374_s9, 256 }
  0x4f   :  { %448 = vmatpush3.bf16.msra.mxu1 %v445_v6  ;;  %454 = vmatprep.subr.bf16.mxu0 %v453_v13  ;;  %v393_v31 = vld [vmem:[%s743_s6] ss:$0 sm:$0xff]  ;;  %p557_p4 = scmp.ne.s32.totalorder %s374_s9, %s556_s4  ;;  %p562_p6 = scmp.lt.s32.totalorder %s556_s4, %s556_s4 }
  0x50   :  { %417 = vmatmul.mubr.msk.f32.vlgmr.msra.gmra.mrb[0].mxu0 %vm93_vm0, %v83_v7  ;;  %450 = vmatprep.subr.bf16.mxu1 %v449_v10 }
  0x51   :  { %456 = vmatpush3.bf16.msra.mxu0 %v453_v13  ;;  %p563_p7 = por %p562_p6, %p561_p5 }
  0x52   :  { %458 = vmatprep.subr.bf16.mxu0 %v457_v23 }
  0x53   :  { %452 = vmatpush3.bf16.msra.mxu1 %v449_v10  ;;  %p564_p8 = pnand %p563_p7, %p557_p4 }
  0x55   :  { %460 = vmatpush3.bf16.msra.mxu0 %v457_v23 }
 0x123   :  { %v418_v15 = vpop.f32.mrb[0].mxu0 }
 0x124   :  { %v172_v16 = vadd.f32 %v418_v15, %v387_v14  ;;  %v166_v17 = vpop.f32.mrb[1].mxu0 }
 0x125   :  { %v167_v18 = vadd.f32 %v387_v14, %v166_v17 }
 0x126   :  { %v176_v20 = vmax.f32 %v172_v16, 0.0 }
 0x127   :  { %v175_v19 = vmax.f32 %v167_v18, 0.0 }
 0x129   :  { %427 = vmatprep.mubr.msk.f32.mxu1 %vm188_vm1, %v175_v19 }
 0x12a   :  { %428 = vmatmul.mubr.msk.f32.vlgmr.msra.gmra.mrb[0].mxu1 %vm188_vm1, %v176_v20 }
 0x1fd   :  { %v429_v25 = vpop.f32.mrb[0].mxu1 }
 0x1fe   :  { %v267_v26 = vadd.f32 %v429_v25, %v390_v24  ;;  %v261_v27 = vpop.f32.mrb[1].mxu1 }
 0x1ff   :  { %v262_v28 = vadd.f32 %v390_v24, %v261_v27 }
 0x200   :  { %v271_v30 = vmax.f32 %v267_v26, 0.0 }
 0x201   :  { %v270_v29 = vmax.f32 %v262_v28, 0.0 }
 0x203   :  { %438 = vmatprep.mubr.msk.f32.mxu0 %vm188_vm1, %v270_v29 }
 0x204   :  { %439 = vmatmul.mubr.msk.f32.vlgmr.msra.gmra.mrb[2].mxu0 %vm188_vm1, %v271_v30 }
 0x2d7   :  { %v440_v32 = vpop.f32.mrb[2].mxu0 }
 0x2d8   :  { %v361_v33 = vadd.f32 %v440_v32, %v393_v31  ;;  %v355_v34 = vpop.f32.mrb[3].mxu0 }
 0x2d9   :  { %v356_v35 = vadd.f32 %v393_v31, %v355_v34 }
 0x2da   :  { %v365_v36 = vmax.f32 %v361_v33, 0.0 }
 0x2db   :  { %v364_v37 = vmax.f32 %v356_v35, 0.0 }
 0x2dc   :  { %367 = vst.msk [vmem:[#allocation10 + $0x8] sm:$0xff] %vm188_vm1, %v365_v36 }
 0x2dd   :  { %366 = vst.msk [vmem:[#allocation10] sm:$0xff] %vm188_vm1, %v364_v37 }
 0x2de   :  { %567 = shalt.err (!%p564_p8)
}
 0x2df   :  { %s568_s11 = scalar_lea.hbm %s744_s7, 256 }
 0x2e0   :  { %p569_p9 = scmp.ne.s32.totalorder %s744_s7, %s568_s11  ;;  %p572_p10 = scmp.lt.u32.totalorder %s568_s11, %s744_s7 }
 0x2e2   :  { %p574_p11 = pnand %p572_p10, %p569_p9 }
 0x2e4   :  { %577 = shalt.err (!%p574_p11)
}
 0x2e5   :  { %379 = dma.vmem_to_hbm [thread:$0]  %s374_s9, 256, %s744_s7, [#allocation4], %s588_s13, %s588_s13, %s589_s14  }
 0x2e6   :  { %584 = dma.done.wait [#allocation4], 256  }
 0x2e7   :  { %585 = vsyncadd [#allocation4], 4294967040 }
 0x2e8   :  { %383 = vsyncpa [#allocation3], 1 }
 0x2e9   :  { %384 = vsyncpa [#allocation6], 1 }
 0x2ea   :  { %385 = vsyncpa [#allocation9], 1 }
 0x2eb   :  { %386 = vsyncpa [#allocation4], 1 }

</bundles_post_ra>
